<compile_context>
chip_gen: v6e
topology: v6e:2x2x1
jax: 0.10.0
libtpu: 0.0.40
codegen_flags: <defaults>
</compile_context>

<pallas_src>
import functools

import jax
import jax.numpy as jnp
from jax.experimental import pallas as pl
from jax.experimental.pallas import tpu as pltpu

_LANE = 128
_TN_CAP = 65536                     # lane-dense N tile cap (multiple of 128)
_VMEM_BUDGET = 12 * 1024 * 1024     # stay under v5e's 16 MiB default scoped VMEM
_N_CORE_SPLITS = 2                  # v7x has 2 TensorCores; extra parallel axis is free elsewhere


def _seg_loss_kernel(logits_ref, labels_ref, out_ref, acc_ref, *,
                     n_tiles, tn, n_valid, mask_from):
    # logits_ref: (1, C, TN)    native dtype (f32 / bf16) slab for (batch b, split s, tile t)
    # labels_ref: (1, 1, TN)    int32
    # out_ref:    (1, 1, 1, 128) f32 per-(batch, split) partial sum (lane-dense row)
    # acc_ref:    (1, TN)       f32 per-lane loss accumulator across the inner tile axis
    s = pl.program_id(1)
    t = pl.program_id(2)

    @pl.when(t == 0)
    def _init():
        acc_ref[...] = jnp.zeros_like(acc_ref)

    x = logits_ref[0].astype(jnp.float32)      # (C, TN) -- upcast AFTER the DMA (bf16-friendly)
    lab = labels_ref[0]                        # (1, TN) int32
    num_classes = x.shape[0]

    # numerically stable cross entropy along the class (sublane) axis
    m = jnp.max(x, axis=0, keepdims=True)                        # (1, TN)
    z = x - m                                                    # (C, TN)
    lse = jnp.log(jnp.sum(jnp.exp(z), axis=0, keepdims=True))    # (1, TN)

    # static unrolled correct-class select chain (C is tiny and known at trace time)
    correct = jnp.zeros_like(lse)
    for c in range(num_classes):
        correct = jnp.where(lab == c, z[c:c + 1, :], correct)
    per_point = lse - correct                                    # (1, TN)

    if mask_from is None:
        # no padded columns anywhere: pure lane-aligned VPU add every step
        acc_ref[...] += per_point
    else:
        g = s * n_tiles + t                    # global N-tile index
        is_tail = g >= mask_from               # only these tiles can hold padded columns

        @pl.when(jnp.logical_not(is_tail))
        def _acc_full():
            acc_ref[...] += per_point

        @pl.when(is_tail)
        def _acc_masked():
            col = g * tn + jax.lax.broadcasted_iota(jnp.int32, (1, tn), 1)
            acc_ref[...] += jnp.where(col < n_valid, per_point, 0.0)

    @pl.when(t == pl.num_programs(2) - 1)
    def _finalize():
        total = jnp.sum(acc_ref[...])          # single cross-lane reduce per (batch, split)
        lane = jax.lax.broadcasted_iota(jnp.int32, (1, 1, 1, _LANE), 3)
        out_ref[...] = jnp.where(lane == 0, total, 0.0)   # lane-dense (1,1,1,128) store


def seg_loss_pallas(prediction, label, *, tn_cap=_TN_CAP):
    """prediction: (B, C, N) float logits (f32 or bf16); label: (B, N) int ids. Returns scalar f32."""
    B, C, N = prediction.shape
    itemsize = jnp.dtype(prediction.dtype).itemsize

    # --- v7x: split N across the 2 TensorCores when there are >= 2 lane tiles ---
    tiles128 = pl.cdiv(N, _LANE)
    n_splits = _N_CORE_SPLITS if tiles128 >= _N_CORE_SPLITS else 1
    cols_per_split = pl.cdiv(tiles128, n_splits) * _LANE

    # --- N tile: as large as possible within an explicit VMEM budget (P-feedback #1/#5) ---
    # per-column bytes: 2x double-buffered (logits + labels) + f32 accumulator
    bytes_per_col = 2 * (C * itemsize + 4) + 4
    tn_vmem = max(_LANE, (_VMEM_BUDGET // bytes_per_col) // _LANE * _LANE)
    tn = max(_LANE, min(tn_cap, tn_vmem, cols_per_split))

    n_tiles = pl.cdiv(cols_per_split, tn)              # inner (reduction) grid axis
    last_block = pl.cdiv(N, tn) - 1                    # last block containing any valid column
    padded_cols = n_splits * n_tiles * tn
    mask_from = (N // tn) if padded_cols != N else None  # first global tile with padded columns

    labels3 = label.astype(jnp.int32).reshape(B, 1, N)   # metadata reshape only, no HBM copy

    def _in_map(b, s, t):
        # clamp so a fully-out-of-range block (split padding) re-reads the last
        # valid block instead of issuing an OOB DMA; its columns are masked out.
        g = jnp.minimum(s * n_tiles + t, last_block)
        return (b, 0, g)

    kernel = functools.partial(_seg_loss_kernel, n_tiles=n_tiles, tn=tn,
                               n_valid=N, mask_from=mask_from)

    partials = pl.pallas_call(
        kernel,
        out_shape=jax.ShapeDtypeStruct((B, n_splits, 1, _LANE), jnp.float32),
        grid=(B, n_splits, n_tiles),
        in_specs=[
            pl.BlockSpec((1, C, tn), _in_map),   # logits tile (native dtype, partial edge block ok)
            pl.BlockSpec((1, 1, tn), _in_map),   # labels tile
        ],
        # one lane row per (batch, split), resident across the inner (reduction) axis
        out_specs=pl.BlockSpec((1, 1, 1, _LANE), lambda b, s, t: (b, s, 0, 0)),
        scratch_shapes=[pltpu.VMEM((1, tn), jnp.float32)],
        compiler_params=pltpu.CompilerParams(
            # batch and split axes are independent -> megacore on v7x;
            # inner N-tile axis is the reduction into the scratch accumulator.
            dimension_semantics=("parallel", "parallel", "arbitrary"),
        ),
    )(prediction, labels3)

    return jnp.sum(partials) / (B * N)   # 'mean' reduction over all points


def _ref_loss(pred_f32, lab):
    logp = jax.nn.log_softmax(pred_f32, axis=1)
    return -jnp.mean(jnp.take_along_axis(logp, lab[:, None, :], axis=1))


if __name__ == "__main__":
    key = jax.random.PRNGKey(0)
    # Small shapes consistent with the model: nclasses=3 (pedestrian/vehicle/ghost),
    # B=2 point-cloud batches, N=128 points each.
    B, C, N = 2, 3, 128
    k1, k2, k3, k4, k5, k6 = jax.random.split(key, 6)

    prediction = jax.random.normal(k1, (B, C, N), dtype=jnp.float32)
    label = jax.random.randint(k2, (B, N), 0, C, dtype=jnp.int32)

    loss = jax.block_until_ready(seg_loss_pallas(prediction, label))
    ref = _ref_loss(prediction, label)
    assert jnp.allclose(loss, ref, atol=1e-5), (float(loss), float(ref))

    # native bf16 logits path (no wrapper upcast; kernel upcasts after the DMA)
    pred_bf16 = prediction.astype(jnp.bfloat16)
    loss_bf16 = jax.block_until_ready(seg_loss_pallas(pred_bf16, label))
    ref_bf = _ref_loss(pred_bf16.astype(jnp.float32), label)
    assert jnp.allclose(loss_bf16, ref_bf, atol=1e-4), (float(loss_bf16), float(ref_bf))

    # N not a multiple of 128 -> exercises the 2-way split + partial edge block + tail mask
    N2 = 160
    pred2 = jax.random.normal(k3, (B, C, N2), dtype=jnp.float32)
    lab2 = jax.random.randint(k4, (B, N2), 0, C, dtype=jnp.int32)
    loss2 = jax.block_until_ready(seg_loss_pallas(pred2, lab2))
    ref2 = _ref_loss(pred2, lab2)
    assert jnp.allclose(loss2, ref2, atol=1e-5), (float(loss2), float(ref2))

    # Small tile cap + N=640 -> multiple inner tiles per split, split padding and
    # the clamped (re-read + fully masked) block path.
    N3 = 640
    pred3 = jax.random.normal(k5, (B, C, N3), dtype=jnp.float32)
    lab3 = jax.random.randint(k6, (B, N3), 0, C, dtype=jnp.int32)
    loss3 = jax.block_until_ready(seg_loss_pallas(pred3, lab3, tn_cap=128))
    ref3 = _ref_loss(pred3, lab3)
    assert jnp.allclose(loss3, ref3, atol=1e-5), (float(loss3), float(ref3))

    print("KERNEL_OK")
</pallas_src>

<mosaic_0001>
module attributes {stable_mosaic.version = 11 : i64} {
  func.func @_seg_loss_kernel(%arg0: i32, %arg1: i32, %arg2: i32, %arg3: memref<1x3x128xf32, #tpu.memory_space<vmem>>, %arg4: memref<1x1x128xi32, #tpu.memory_space<vmem>>, %arg5: memref<1x1x1x128xf32, #tpu.memory_space<vmem>>, %arg6: memref<1x128xf32, #tpu.memory_space<vmem>>) attributes {dimension_semantics = [#tpu.dimension_semantics<parallel>, #tpu.dimension_semantics<parallel>, #tpu.dimension_semantics<arbitrary>], iteration_bounds = array<i64: 2, 1, 1>, scalar_prefetch = 0 : i64, scratch_operands = 1 : i64, tpu.core_type = #tpu.core_type<tc>, window_params = [{transform_indices = @transform_0, window_bounds = array<i64: 1, 3, 128>}, {transform_indices = @transform_1, window_bounds = array<i64: 1, 1, 128>}, {transform_indices = @transform_2, window_bounds = array<i64: 1, 1, 1, 128>}]} {
    %c0_i32 = arith.constant 0 : i32
    %0 = arith.cmpi eq, %arg2, %c0_i32 : i32
    %1 = arith.extui %0 : i1 to i32
    %c0_i32_0 = arith.constant 0 : i32
    %2 = arith.cmpi ne, %1, %c0_i32_0 : i32
    scf.if %2 {
      %cst_15 = arith.constant 0.000000e+00 : f32
      %35 = vector.broadcast %cst_15 : f32 to vector<1x128xf32>
      %c0_16 = arith.constant 0 : index
      %c0_17 = arith.constant 0 : index
      %36 = vector.load %arg6[%c0_16, %c0_17] : memref<1x128xf32, #tpu.memory_space<vmem>>, vector<1x128xf32>
      tpu.vector_store %arg6[%c0_16, %c0_17], %35 {strides = array<i32>} : memref<1x128xf32, #tpu.memory_space<vmem>>, vector<1x128xf32>,
    } else {
    }
    %c0 = arith.constant 0 : index
    %c0_1 = arith.constant 0 : index
    %c0_2 = arith.constant 0 : index
    %3 = vector.load %arg3[%c0, %c0_1, %c0_2] : memref<1x3x128xf32, #tpu.memory_space<vmem>>, vector<1x3x128xf32>
    %4 = vector.shape_cast %3 : vector<1x3x128xf32> to vector<3x128xf32>
    %c0_3 = arith.constant 0 : index
    %c0_4 = arith.constant 0 : index
    %c0_5 = arith.constant 0 : index
    %5 = vector.load %arg4[%c0_3, %c0_4, %c0_5] : memref<1x1x128xi32, #tpu.memory_space<vmem>>, vector<1x1x128xi32>
    %6 = vector.shape_cast %5 : vector<1x1x128xi32> to vector<1x128xi32>
    %cst = arith.constant dense<0xFF800000> : vector<128xf32>
    %7 = vector.multi_reduction <maximumf>, %4, %cst [0] : vector<3x128xf32> to vector<128xf32>
    %8 = vector.shape_cast %7 : vector<128xf32> to vector<1x128xf32>
    %9 = vector.broadcast %8 : vector<1x128xf32> to vector<3x128xf32>
    %10 = arith.subf %4, %9 : vector<3x128xf32>
    %11 = math.exp %10 : vector<3x128xf32>
    %cst_6 = arith.constant dense<0.000000e+00> : vector<128xf32>
    %12 = vector.multi_reduction <add>, %11, %cst_6 [0] : vector<3x128xf32> to vector<128xf32>
    %13 = vector.shape_cast %12 : vector<128xf32> to vector<1x128xf32>
    %14 = math.log %13 : vector<1x128xf32>
    %cst_7 = arith.constant 0.000000e+00 : f32
    %15 = vector.broadcast %cst_7 : f32 to vector<1x128xf32>
    %c0_i32_8 = arith.constant 0 : i32
    %16 = vector.broadcast %c0_i32_8 : i32 to vector<1x128xi32>
    %17 = arith.cmpi eq, %6, %16 : vector<1x128xi32>
    %18 = vector.extract_strided_slice %10 {offsets = [0, 0], sizes = [1, 128], strides = [1, 1]} : vector<3x128xf32> to vector<1x128xf32>
    %19 = arith.select %17, %18, %15 : vector<1x128xi1>, vector<1x128xf32>
    %c1_i32 = arith.constant 1 : i32
    %20 = vector.broadcast %c1_i32 : i32 to vector<1x128xi32>
    %21 = arith.cmpi eq, %6, %20 : vector<1x128xi32>
    %22 = vector.extract_strided_slice %10 {offsets = [1, 0], sizes = [1, 128], strides = [1, 1]} : vector<3x128xf32> to vector<1x128xf32>
    %23 = arith.select %21, %22, %19 : vector<1x128xi1>, vector<1x128xf32>
    %c2_i32 = arith.constant 2 : i32
    %24 = vector.broadcast %c2_i32 : i32 to vector<1x128xi32>
    %25 = arith.cmpi eq, %6, %24 : vector<1x128xi32>
    %26 = vector.extract_strided_slice %10 {offsets = [2, 0], sizes = [1, 128], strides = [1, 1]} : vector<3x128xf32> to vector<1x128xf32>
    %27 = arith.select %25, %26, %23 : vector<1x128xi1>, vector<1x128xf32>
    %28 = arith.subf %14, %27 : vector<1x128xf32>
    %c0_9 = arith.constant 0 : index
    %c0_10 = arith.constant 0 : index
    %29 = vector.load %arg6[%c0_9, %c0_10] : memref<1x128xf32, #tpu.memory_space<vmem>>, vector<1x128xf32>
    %30 = arith.addf %29, %28 : vector<1x128xf32>
    %c0_11 = arith.constant 0 : index
    %c0_12 = arith.constant 0 : index
    %31 = vector.load %arg6[%c0_11, %c0_12] : memref<1x128xf32, #tpu.memory_space<vmem>>, vector<1x128xf32>
    tpu.vector_store %arg6[%c0_11, %c0_12], %30 {strides = array<i32>} : memref<1x128xf32, #tpu.memory_space<vmem>>, vector<1x128xf32>,
    %c0_i32_13 = arith.constant 0 : i32
    %32 = arith.cmpi eq, %arg2, %c0_i32_13 : i32
    %33 = arith.extui %32 : i1 to i32
    %c0_i32_14 = arith.constant 0 : i32
    %34 = arith.cmpi ne, %33, %c0_i32_14 : i32
    scf.if %34 {
      %c0_15 = arith.constant 0 : index
      %c0_16 = arith.constant 0 : index
      %35 = vector.load %arg6[%c0_15, %c0_16] : memref<1x128xf32, #tpu.memory_space<vmem>>, vector<1x128xf32>
      %36 = vector.shape_cast %35 : vector<1x128xf32> to vector<1x1x128xf32>
      %cst_17 = arith.constant dense<0.000000e+00> : vector<1xf32>
      %37 = vector.multi_reduction <add>, %36, %cst_17 [1, 2] : vector<1x1x128xf32> to vector<1xf32>
      %38 = vector.shape_cast %37 : vector<1xf32> to vector<1x1x1xf32>
      %39 = vector.extract %38[0, 0, 0] : f32 from vector<1x1x1xf32>
      %40 = tpu.iota {dimensions = array<i32: 3>} : vector<1x1x1x128xi32>
      %c0_i32_18 = arith.constant 0 : i32
      %41 = vector.broadcast %c0_i32_18 : i32 to vector<1x1x1x128xi32>
      %42 = arith.cmpi eq, %40, %41 : vector<1x1x1x128xi32>
      %cst_19 = arith.constant 0.000000e+00 : f32
      %43 = vector.broadcast %39 : f32 to vector<1x1x1x128xf32>
      %44 = vector.broadcast %cst_19 : f32 to vector<1x1x1x128xf32>
      %45 = arith.select %42, %43, %44 : vector<1x1x1x128xi1>, vector<1x1x1x128xf32>
      %c0_20 = arith.constant 0 : index
      %c0_21 = arith.constant 0 : index
      %c0_22 = arith.constant 0 : index
      %c0_23 = arith.constant 0 : index
      %46 = vector.load %arg5[%c0_20, %c0_21, %c0_22, %c0_23] : memref<1x1x1x128xf32, #tpu.memory_space<vmem>>, vector<1x1x1x128xf32>
      tpu.vector_store %arg5[%c0_20, %c0_21, %c0_22, %c0_23], %45 {strides = array<i32>} : memref<1x1x1x128xf32, #tpu.memory_space<vmem>>, vector<1x1x1x128xf32>,
    } else {
    }
    return
  }
  func.func @transform_0(%arg0: i32, %arg1: i32, %arg2: i32) -> (i32, i32, i32) {
    %c1_i32 = arith.constant 1 : i32
    %0 = arith.muli %arg1, %c1_i32 : i32
    %1 = arith.addi %0, %arg2 : i32
    %c0_i32 = arith.constant 0 : i32
    %2 = arith.minsi %1, %c0_i32 : i32
    %c0_i32_0 = arith.constant 0 : i32
    %c0_i32_1 = arith.constant 0 : i32
    return %arg0, %c0_i32_0, %2 : i32, i32, i32
  }
  func.func @transform_1(%arg0: i32, %arg1: i32, %arg2: i32) -> (i32, i32, i32) {
    %c1_i32 = arith.constant 1 : i32
    %0 = arith.muli %arg1, %c1_i32 : i32
    %1 = arith.addi %0, %arg2 : i32
    %c0_i32 = arith.constant 0 : i32
    %2 = arith.minsi %1, %c0_i32 : i32
    %c0_i32_0 = arith.constant 0 : i32
    %c0_i32_1 = arith.constant 0 : i32
    return %arg0, %c0_i32_0, %2 : i32, i32, i32
  }
  func.func @transform_2(%arg0: i32, %arg1: i32, %arg2: i32) -> (i32, i32, i32, i32) {
    %c0_i32 = arith.constant 0 : i32
    %c0_i32_0 = arith.constant 0 : i32
    %c0_i32_1 = arith.constant 0 : i32
    return %arg0, %arg1, %c0_i32, %c0_i32_0 : i32, i32, i32, i32
  }
}

</mosaic_0001>

<bundles_post_ra>
// kernel: tpu_custom_call.1
= control target key start
LH: loop header
LB: loop body
LE: loop exit
PB: predicated region body
PF: predicated region fallthrough
CT: control target
= control target key end

     0   :  { %7 = vsyncpa [#allocation4], 0  ;;  %s699_s0 = inlined_call_operand.vmem [shape: f32[2,3,128], index: 0, kind: input, shape index: {}]   ;;  %s700_s1 = inlined_call_operand.vmem [shape: s32[2,1,128], index: 1, kind: input, shape index: {}]   ;;  %s701_s2 = inlined_call_operand.hbm [shape: f32[2,1,1,128], index: 2, kind: output, shape index: {}]  }
   0x1   :  { %9 = vsyncpa [#allocation4 + $0x1], 0  ;;  %s585_s9 = smov 0   ;;  %s587_s10 = smov 0  }
   0x2   :  { %s589_s11 = smov 0   ;;  %s591_s12 = smov 0  }
   0x3   :  { %s593_s13 = smov 0   ;;  %s595_s14 = smov 0  }
   0x4 LB: > { %s417_s15 = sadd.s32 4294967295, %s565_s14   ;;  %s418_s16 = sadd.s32 4294967294, %s565_s14   ;;  %s565_s14 = sphi %s595_s14, %s15_s14   ;;  %s561_s13 = sphi %s593_s13, %s708_s13   ;;  %s557_s12 = sphi %s591_s12, %s707_s12   ;;  %s553_s11 = sphi %s589_s11, %s706_s11   ;;  %s549_s10 = sphi %s587_s10, %s705_s10   ;;  %s545_s9 = sphi %s585_s9, %s704_s9  }
   0x5   : > { %s34_s17 = sadd.s32 1, %s561_s13  ;;  %s111_s18 = sadd.s32 1, %s553_s11 }
   0x6   : > { %p36_p0 = scmp.ge.s32.totalorder %s34_s17, 2  ;;  %p121_p1 = scmp.ne.s32.totalorder %s553_s11, %s549_s10 }
   0x7   : > { %p122_p2 = scmp.eq.s32.totalorder %s417_s15, 1  ;;  %p127_p3 = scmp.ne.s32.totalorder %s549_s10, %s545_s9 }
   0x8   : > { %s710_s17 = smov (%p36_p0, %s34_s17), 0  ;;  %p128_p5 = scmp.eq.s32.totalorder %s418_s16, 1 }
   0x9   : > { %p625_p4 = por %p122_p2, %p121_p1  ;;  %s106_s20 = ssub.s32 %s561_s13, %s710_s17 }
   0xa   : > { %p421_p6 = scmp.ge.s32.totalorder %s565_s14, 1  ;;  %p109_p7 = scmp.eq.s32.totalorder %s106_s20, 0 }
   0xb   : > { %p632_p8 = por %p128_p5, %p127_p3  ;;  %p177_p9 = scmp.lt.s32.totalorder %s565_s14, 3 }
   0xc   : > { %s638_s22 = scalar_select %p109_p7, %s553_s11, %s111_s18  }
   0xd   : > { %p178_p10 = pnand %p421_p6, %p177_p9 }
   0xe   : > { %p215_p11 = scmp.lt.s32.totalorder (!%p178_p10), %s557_s12, 1  ;;  %s210_s3 = sand.u32 (!%p178_p10), 1, %s549_s10  }
   0xf   : > { %181 = sbr.rel (%p178_p10) target bundleno = 313 (0x139), region = 28  ;;  %s423_s4 = sshll.u32 (!%p178_p10), %s557_s12, 4 }
  0x10   : > { %s211_s5 = scalar_lea.vmem (!%p178_p10), [#allocation3], %s210_s3  ;;  %s659_s16 = scalar_lea.hbm (!%p178_p10), %s701_s2, %s423_s4 }
  0x11   : > { %s335_s6 = sshll.u32 (!%p178_p10), %s211_s5, 4  ;;  %s322_s18 = scalar_lea.sflag (!%p178_p10), [#allocation4], %s210_s3  ;;  %s336_s6 = int_to_ptr.vmem [resolvable:$true] %s335_s6 }
  0x12   : > { %s489_s20 = scalar_lea.vmem (!%p178_p10), %s336_s6, 16 }
  0x13   : > { %p490_p12 = scmp.ne.s32.totalorder (!%p178_p10), %s336_s6, %s489_s20 }
  0x14   : > { %v567_v0 = vmov 0.0   ;;  %s642_s23 = scalar_select %p215_p11, %s557_s12, 1  ;;  %vm244_vm0 = vcmask 1042432   ;;  %v568_v12 = vmov 1966171168   ;;  %v271_v14 = vlaneseq }
  0x15   : > { %241 = vst [vmem:[#allocation2] sm:$0x1] %v567_v0  ;;  %v269_v13 = vunpack.c.l.s4 %v568_v12  ;;  %vm304_vm4 = vcmask 1040384   ;;  %p491_p13 = pnand %p490_p12, %p625_p4  ;;  %s569_s12 = smov [#allocation3]  }
  0x16   : > { %s422_s24 = sshll.u32 %s642_s23, 2  ;;  %v272_v19 = vshrl.u32 %v271_v14, 7  ;;  %s233_s30 = scalar_lea.vmem %s700_s1, %s642_s23  ;;  %v316_v48 = vand.u32 127, %v271_v14 }
  0x17   : > { %s221_s27 = scalar_lea.vmem %s699_s0, %s422_s24  ;;  %v270_v18 = vunpack.c.0.s8 %v269_v13  ;;  %v243_v26 = vld [vmem:[%s233_s30] sm:$0x1]  ;;  %p492_p0 = pneg %p491_p13 }
  0x18   : > { %v242_v1 = vld [vmem:[%s221_s27] sm:$0x7]  ;;  %vm264_vm1 = vcmp.eq.s32.totalorder %v243_v26, 0  ;;  %vm266_vm2 = vcmp.eq.s32.totalorder %v243_v26, 1  ;;  %vm292_vm3 = vcmp.eq.s32.totalorder %v243_v26, 2  ;;  %vm317_vm5 = vcmp.eq.s32.totalorder %v316_v48, 0 }
  0x19   : > { %v245_v2 = vsel %vm244_vm0, %v242_v1, -inf  ;;  %v273_v22 = vsub.s32 %v270_v18, %v272_v19  ;;  %s493_s23 = sshll.u32 %s569_s12, 4  ;;  %s494_s23 = int_to_ptr.vmem [resolvable:$false] %s493_s23 }
  0x1a   : > { %v246_v3 = vrot.slane %v245_v2, 4  ;;  %s495_s24 = scalar_lea.vmem %s494_s23, 32  ;;  %p496_p1 = scmp.lt.s32.totalorder %s336_s6, %s494_s23 }
  0x1b   : > { %p497_p2 = scmp.lt.s32.totalorder %s495_s24, %s489_s20 }
  0x1c   : > { %v247_v4 = vmax.f32 %v245_v2, %v246_v3  ;;  %v297_v36 = vld [vmem:[#allocation2] sm:$0x1] }
  0x1d   : > { %p498_p3 = por %p497_p2, %p496_p1 }
  0x1e   : > { %v248_v5 = vrot.slane %v247_v4, 2 }
  0x1f   : > { %p499_p5 = pnand %p498_p3, %p492_p0 }
  0x20   : > { %v249_v6 = vmax.f32 %v247_v4, %v248_v5 }
  0x22   : > { %v250_v7 = vrot.slane %v249_v6, 1 }
  0x24   : > { %v251_v8 = vmax.f32 %v249_v6, %v250_v7 }
  0x26   : > { %v252_v9 = vsub.f32 %v242_v1, %v251_v8 }
  0x28   : > { %v253_v10 = vmul.f32 1.442695, %v252_v9  ;;  %v274_v25 = vrot.slane %v252_v9, %v273_v22  ;;  %v265_v30 = vsel %vm264_vm1, %v252_v9, 0.0 }
  0x2a   : > { %485 = vpow2.f32 %v253_v10  ;;  %v275_v27 = vcombine.high %v274_v25, %v274_v25  ;;  %v282_v28 = vrot.slane %v274_v25, %v273_v22 }
  0x2c   : > { %v289_v29 = vrot.slane %v275_v27, %v273_v22  ;;  %v293_v31 = vcombine.high %v282_v28, %v282_v28 }
  0x2e   : > { %v291_v32 = vsel %vm266_vm2, %v289_v29, %v265_v30 }
  0x2f   : > { %v295_v34 = vsel %vm292_vm3, %v293_v31, %v291_v32 }
  0x37   : > { %v486_v11 = vpop.eup %485 }
  0x38   : > { %v255_v15 = vsel %vm244_vm0, %v486_v11, 0.0 }
  0x39   : > { %v256_v16 = vrot.slane %v255_v15, 4 }
  0x3b   : > { %v257_v17 = vadd.f32 %v256_v16, %v255_v15 }
  0x3d   : > { %v258_v20 = vrot.slane %v257_v17, 2 }
  0x3f   : > { %v259_v21 = vadd.f32 %v258_v20, %v257_v17 }
  0x41   : > { %v260_v23 = vrot.slane %v259_v21, 1 }
  0x43   : > { %v261_v24 = vadd.f32 %v260_v23, %v259_v21 }
  0x45   : > { %487 = vlog2.f32 %v261_v24 }
  0x52   : > { %v488_v33 = vpop.eup %487 }
  0x53   : > { %v263_v35 = vmul.f32 0.6931472, %v488_v33 }
  0x55   : > { %v296_v37 = vsub.f32 %v263_v35, %v295_v34 }
  0x57   : > { %v298_v38 = vadd.f32 %v297_v36, %v296_v37 }
  0x59   : > { %299 = vst [vmem:[#allocation2] sm:$0x1] %v298_v38 }
  0x60   : > { %v303_v39 = vld [vmem:[#allocation2] sm:$0x1] }
  0x61   : > { %v305_v40 = vsel %vm304_vm4, %v303_v39, 0.0 }
  0x62   : > { %306 = vadd.xlane.f32.xlu0 %v305_v40 }
  0xeb   : > { %v307_v41 = vpop.xlane.xlu0 %306 }
  0xec   : > { %v308_v42 = vrot.slane %v307_v41, 4 }
  0xee   : > { %v309_v43 = vadd.f32 %v308_v42, %v307_v41 }
  0xf0   : > { %v310_v44 = vrot.slane %v309_v43, 2 }
  0xf2   : > { %v311_v45 = vadd.f32 %v310_v44, %v309_v43 }
  0xf4   : > { %v312_v46 = vrot.slane %v311_v45, 1 }
  0xf6   : > { %v313_v47 = vadd.f32 %v312_v46, %v311_v45 }
  0xf8   : > { %426 = vpush %v313_v47 }
 0x129   : > { %s427_s7 = spop %426 }
 0x12a   : > { %v318_v49 = vstv %s427_s7 }
 0x12b   : > { %v319_v50 = vsel %vm317_vm5, %v318_v49, 0.0 }
 0x12c   : > { %320 = vst [vmem:[%s211_s5] sm:$0x1] %v319_v50 }
 0x12d   : > { %502 = shalt.err (!%p499_p5)
}
 0x12e   : > { %s503_s25 = scalar_lea.hbm %s659_s16, 16  ;;  %s507_s28 = scalar_lea.hbm %s701_s2, 32 }
 0x12f   : > { %p504_p6 = scmp.ne.s32.totalorder %s659_s16, %s503_s25  ;;  %p508_p10 = scmp.lt.s32.totalorder %s659_s16, %s701_s2 }
 0x130   : > { %p509_p11 = scmp.lt.s32.totalorder %s507_s28, %s503_s25 }
 0x131   : > { %p505_p7 = pnand %p504_p6, %p625_p4 }
 0x132   : > { %p510_p12 = por %p509_p11, %p508_p10 }
 0x133   : > { %p506_p9 = pneg %p505_p7 }
 0x135   : > { %p511_p13 = pnand %p510_p12, %p506_p9 }
 0x137   : > { %514 = shalt.err (!%p511_p13)
}
 0x138   : > { %428 = dma.vmem_to_hbm [thread:$0]  (%p625_p4), %s336_s6, 16, %s659_s16, %s322_s18  }
 0x139 PF: > { %p434_p0 = scmp.ge.s32.totalorder %s565_s14, 2  ;;  %s347_s3 = sand.u32 1, %s545_s9  }
 0x13a   : > { %s348_s4 = scalar_lea.sflag [#allocation4], %s347_s3 }
 0x13b   : > { %p431_p1 = pnand %p434_p0, %p632_p8 }
 0x13d   : > { %p432_p2 = pneg %p431_p1 }
 0x13f   : > { %540 = dma.done.wait (%p432_p2), %s348_s4, 16  }
 0x140   : > { %542 = vsyncadd (%p432_p2), %s348_s4, 4294967280  ;;  %s15_s14 = sadd.s32 1, %s565_s14   ;;  %s704_s9 = smov %s549_s10 }
 0x141   : > { %p12_p3 = scmp.ge.s32.totalorder %s15_s14, 4   ;;  %s705_s10 = smov %s553_s11 }
 0x142   : > { %s706_s11 = smov %s638_s22  ;;  %s707_s12 = smov %s561_s13 }
 0x143   : > { %s708_s13 = smov %s710_s17  ;;  %14 = sbr.rel (!%p12_p3) target bundleno = 4 (0x4), region = 74 }
 0x148   :  { %352 = vsyncpa [#allocation4], 1 }
 0x149   :  { %354 = vsyncpa [#allocation4 + $0x1], 1 }

</bundles_post_ra>
